<compile_context>
chip_gen: v6e
topology: v6e:2x2x1
jax: 0.10.0
libtpu: 0.0.40
codegen_flags: <defaults>
</compile_context>

<pallas_src>
import jax
import jax.numpy as jnp
from jax.experimental import pallas as pl
from jax.experimental.pallas import tpu as pltpu


def _adaptive_pool_matrix(out_size, in_size):
    """A[i, a] = weight of input cell `a` for output cell `i` under torch
    adaptive_avg_pool (== F.interpolate(mode='area')).  Built in float32
    regardless of the model dtype; the only cast happens at the kernel store."""
    i = jnp.arange(out_size)
    start = (i * in_size) // out_size                 # floor(i * in / out)
    end = -((-(i + 1) * in_size) // out_size)         # ceil((i+1) * in / out)
    a = jnp.arange(in_size)
    mask = (a[None, :] >= start[:, None]) & (a[None, :] < end[:, None])
    counts = (end - start).astype(jnp.float32)
    return mask.astype(jnp.float32) / counts[:, None]  # (out_size, in_size)


def _pick_h_block(out_h, out_w, k, out_itemsize):
    """H-chunk per grid step.
    * hb divides out_h and (hb*out_w) % 128 == 0  -> lane-dense unmasked stores;
      otherwise fall back to the full extent (always a legal block shape).
    * Keep the per-step VMEM footprint (one-hot builders + flat f32 operands +
      double-buffered output block) around a few MB (v7x budget)."""
    lane_ok = [hb for hb in range(1, out_h + 1)
               if out_h % hb == 0 and (hb * out_w) % 128 == 0]
    if not lane_ok:
        return out_h
    budget = 8 * 1024 * 1024

    def step_bytes(hb):
        hbw = hb * out_w
        builders = 4 * hbw * (out_h + out_w + 2)   # e_h, e_w, flat-index rows (f32)
        flats = 4 * hbw * 2 * k                    # rows_flat, cols_flat (f32)
        out_blk = 2 * hbw * k * out_itemsize       # double-buffered output block
        return builders + flats + out_blk

    fitting = [hb for hb in lane_ok if step_bytes(hb) <= budget]
    return fitting[-1] if fitting else lane_ok[0]


def _spatial_attention_kernel(rows_ref, cols_ref, out_ref):
    # rows_ref : (k, H) f32, rows_ref[kk, h] = ah[h, kk // c]   (full, resident)
    # cols_ref : (k, W) f32, cols_ref[kk, w] = aw[w, kk % c]    (full, resident)
    # out_ref  : (k, hb*W) d.dtype -- lane-dense block, grid walks H in chunks.
    # Exactness note: flat indices are carried in f32 (H*W < 2^24 assumed).
    k, h_full = rows_ref.shape
    w = cols_ref.shape[1]
    hbw = out_ref.shape[1]
    f32 = jnp.float32

    off = pl.program_id(0) * hbw          # global flat offset of this block

    # Global flat output index j for every lane of this block, replicated over
    # the full H sublane axis (used to build the one-hot row-selector e_h).
    j = jax.lax.broadcasted_iota(jnp.int32, (h_full, hbw), 1) + off
    h = jax.lax.broadcasted_iota(jnp.int32, (h_full, hbw), 0)
    lo = h * w
    # e_h[h, j] = 1 iff j // w == h   (range test; no vector integer division)
    e_h = jnp.where((j >= lo) & (j < lo + w), 1.0, 0.0)            # (H, hbw) f32

    # j // w recovered as a count of strictly-passed row starts, then j % w.
    h_of_j = jnp.sum(jnp.where(j >= lo + w, 1.0, 0.0),
                     axis=0, keepdims=True)                        # (1, hbw) == j//w
    j_row = (jax.lax.broadcasted_iota(jnp.int32, (1, hbw), 1) + off).astype(f32)
    w_of_j = j_row - w * h_of_j                                    # (1, hbw) == j%w
    b = jax.lax.broadcasted_iota(jnp.int32, (w, hbw), 0).astype(f32)
    # e_w[b, j] = 1 iff j % w == b
    e_w = jnp.where(b == w_of_j, 1.0, 0.0)                         # (W, hbw) f32

    # Rank-1 outer product per channel, assembled lane-dense via two tiny
    # one-hot MXU matmuls (the "gather") + one VPU multiply + cast at store.
    rows_flat = jnp.dot(rows_ref[...], e_h, preferred_element_type=f32)  # (k, hbw)
    cols_flat = jnp.dot(cols_ref[...], e_w, preferred_element_type=f32)  # (k, hbw)
    out_ref[...] = (rows_flat * cols_flat).astype(out_ref.dtype)


def spatial_attention_rect(inputs, w_parts=1, h_parts=1, detached=False):
    """JAX/Pallas port of spatial_attention_rect.forward.

    `inputs` is a sequence of NCHW arrays; only the last element's shape/dtype
    matter (mirrors the PyTorch module).  `detached` is unused, kept for
    signature fidelity."""
    d = inputs[-1]
    r, c = h_parts, w_parts
    k = r * c
    dtype = d.dtype
    h_in, w_in = d.shape[-2], d.shape[-1]

    if c == w_in:
        # PyTorch only checks the LAST spatial dim; no interpolation here, so
        # the spatial output is (r, c) even if r != d.shape[-2] (intentional).
        # A few hundred bytes: plain XLA constant, no kernel launch overhead.
        return jnp.eye(k, dtype=dtype).reshape(1, k, r, c)

    # 'area' interpolation (== adaptive average pooling) to d's spatial size.
    out_h, out_w = h_in, w_in
    ah = _adaptive_pool_matrix(out_h, r)              # (H, r) f32
    aw = _adaptive_pool_matrix(out_w, c)              # (W, c) f32

    # One-hot identity -> channel kk only needs part (a, b) = (kk//c, kk%c).
    a_idx = jnp.arange(k) // c
    b_idx = jnp.arange(k) % c
    rows = ah.T[a_idx]                                # (k, H) f32
    cols = aw.T[b_idx]                                # (k, W) f32

    hw = out_h * out_w
    itemsize = jnp.dtype(dtype).itemsize
    hb = _pick_h_block(out_h, out_w, k, itemsize)
    hbw = hb * out_w
    grid = (out_h // hb,)

    cost = pl.CostEstimate(
        flops=2 * k * hw,
        transcendentals=0,
        bytes_accessed=k * hw * itemsize + 4 * k * (out_h + out_w))

    out_flat = pl.pallas_call(
        _spatial_attention_kernel,
        out_shape=jax.ShapeDtypeStruct((k, hw), dtype),
        grid=grid,
        in_specs=[
            pl.BlockSpec((k, out_h), lambda i: (0, 0)),   # rows: tiny, VMEM-resident
            pl.BlockSpec((k, out_w), lambda i: (0, 0)),   # cols: tiny, VMEM-resident
        ],
        out_specs=pl.BlockSpec((k, hbw), lambda i: (0, i)),
        compiler_params=pltpu.CompilerParams(
            dimension_semantics=("parallel",)),
        cost_estimate=cost,
    )(rows, cols)

    return out_flat.reshape(1, k, out_h, out_w)


if __name__ == "__main__":
    key = jax.random.PRNGKey(0)
    k1, k2 = jax.random.split(key)

    # input is a list of feature maps; only the last (d) matters.
    feat0 = jax.random.normal(k1, (2, 4, 8, 8), jnp.float32)
    d = jax.random.normal(k2, (2, 4, 16, 16), jnp.float32)   # NCHW

    h_parts, w_parts = 2, 2
    out = spatial_attention_rect([feat0, d], w_parts=w_parts, h_parts=h_parts)
    out = jax.block_until_ready(out)
    assert out.shape == (1, h_parts * w_parts, 16, 16), out.shape

    # Independent check: 2x2 parts area-upsampled to 16x16 means each channel
    # is an indicator of one 8x8 quadrant (row-major channel ordering).
    expected = jnp.zeros((4, 16, 16), jnp.float32)
    expected = expected.at[0, :8, :8].set(1.0)    # (row 0, col 0)
    expected = expected.at[1, :8, 8:].set(1.0)    # (row 0, col 1)
    expected = expected.at[2, 8:, :8].set(1.0)    # (row 1, col 0)
    expected = expected.at[3, 8:, 8:].set(1.0)    # (row 1, col 1)
    assert jnp.allclose(out[0], expected, atol=1e-6), "mismatch vs reference"

    # Non-uniform area interpolation (output not divisible by parts); this
    # exercises the full-extent (non-128-aligned) fallback block.
    d2 = jax.random.normal(k2, (1, 3, 6, 10), jnp.float32)
    out3 = jax.block_until_ready(
        spatial_attention_rect([d2], w_parts=3, h_parts=2))
    assert out3.shape == (1, 6, 6, 10), out3.shape
    ah_ref = _adaptive_pool_matrix(6, 2)
    aw_ref = _adaptive_pool_matrix(10, 3)
    eye_ref = jnp.eye(6, dtype=jnp.float32).reshape(6, 2, 3)
    ref = jnp.einsum('ha,kab,wb->khw', ah_ref, eye_ref, aw_ref)
    assert jnp.allclose(out3[0], ref, atol=1e-6), "mismatch vs area-interp ref"

    # Also exercise the no-interpolation branch (c == d.shape[-1]); this path
    # intentionally bypasses pallas_call (tiny constant output).
    d_small = jax.random.normal(k2, (2, 4, 5, w_parts), jnp.float32)
    out2 = jax.block_until_ready(
        spatial_attention_rect([d_small], w_parts=w_parts, h_parts=h_parts))
    assert out2.shape == (1, 4, 2, 2), out2.shape
    assert jnp.allclose(out2[0].reshape(4, 4), jnp.eye(4, dtype=jnp.float32))

    print("KERNEL_OK")
</pallas_src>

<mosaic_0001>
module attributes {stable_mosaic.version = 11 : i64} {
  func.func @_spatial_attention_kernel(%arg0: i32, %arg1: memref<4x16xf32, #tpu.memory_space<vmem>>, %arg2: memref<4x16xf32, #tpu.memory_space<vmem>>, %arg3: memref<4x256xf32, #tpu.memory_space<vmem>>) attributes {dimension_semantics = [#tpu.dimension_semantics<parallel>], iteration_bounds = array<i64: 1>, scalar_prefetch = 0 : i64, scratch_operands = 0 : i64, tpu.core_type = #tpu.core_type<tc>, window_params = [{pipeline_mode = #tpu.pipeline_mode<synchronous>, transform_indices = @transform_0, window_bounds = array<i64: 4, 16>}, {pipeline_mode = #tpu.pipeline_mode<synchronous>, transform_indices = @transform_1, window_bounds = array<i64: 4, 16>}, {transform_indices = @transform_2, window_bounds = array<i64: 4, 256>}]} {
    %c256_i32 = arith.constant 256 : i32
    %0 = arith.muli %arg0, %c256_i32 : i32
    %1 = tpu.iota {dimensions = array<i32: 1>} : vector<16x256xi32>
    %2 = vector.broadcast %0 : i32 to vector<16x256xi32>
    %3 = arith.addi %1, %2 : vector<16x256xi32>
    %4 = tpu.iota {dimensions = array<i32: 0>} : vector<16x256xi32>
    %c16_i32 = arith.constant 16 : i32
    %5 = vector.broadcast %c16_i32 : i32 to vector<16x256xi32>
    %6 = arith.muli %4, %5 : vector<16x256xi32>
    %7 = arith.cmpi sge, %3, %6 : vector<16x256xi32>
    %c16_i32_0 = arith.constant 16 : i32
    %8 = vector.broadcast %c16_i32_0 : i32 to vector<16x256xi32>
    %9 = arith.addi %6, %8 : vector<16x256xi32>
    %10 = arith.cmpi slt, %3, %9 : vector<16x256xi32>
    %11 = arith.andi %7, %10 : vector<16x256xi1>
    %cst = arith.constant 1.000000e+00 : f32
    %cst_1 = arith.constant 0.000000e+00 : f32
    %12 = vector.broadcast %cst : f32 to vector<16x256xf32>
    %13 = vector.broadcast %cst_1 : f32 to vector<16x256xf32>
    %14 = arith.select %11, %12, %13 : vector<16x256xi1>, vector<16x256xf32>
    %c16_i32_2 = arith.constant 16 : i32
    %15 = vector.broadcast %c16_i32_2 : i32 to vector<16x256xi32>
    %16 = arith.addi %6, %15 : vector<16x256xi32>
    %17 = arith.cmpi sge, %3, %16 : vector<16x256xi32>
    %cst_3 = arith.constant 1.000000e+00 : f32
    %cst_4 = arith.constant 0.000000e+00 : f32
    %18 = vector.broadcast %cst_3 : f32 to vector<16x256xf32>
    %19 = vector.broadcast %cst_4 : f32 to vector<16x256xf32>
    %20 = arith.select %17, %18, %19 : vector<16x256xi1>, vector<16x256xf32>
    %cst_5 = arith.constant dense<0.000000e+00> : vector<256xf32>
    %21 = vector.multi_reduction <add>, %20, %cst_5 [0] : vector<16x256xf32> to vector<256xf32>
    %22 = vector.shape_cast %21 : vector<256xf32> to vector<1x256xf32>
    %23 = tpu.iota {dimensions = array<i32: 1>} : vector<1x256xi32>
    %24 = vector.broadcast %0 : i32 to vector<1x256xi32>
    %25 = arith.addi %23, %24 : vector<1x256xi32>
    %26 = arith.sitofp %25 : vector<1x256xi32> to vector<1x256xf32>
    %cst_6 = arith.constant 1.600000e+01 : f32
    %27 = vector.broadcast %cst_6 : f32 to vector<1x256xf32>
    %28 = arith.mulf %27, %22 : vector<1x256xf32>
    %29 = arith.subf %26, %28 : vector<1x256xf32>
    %30 = tpu.iota {dimensions = array<i32: 0>} : vector<16x256xi32>
    %31 = arith.sitofp %30 : vector<16x256xi32> to vector<16x256xf32>
    %32 = vector.broadcast %29 : vector<1x256xf32> to vector<16x256xf32>
    %33 = arith.cmpf oeq, %31, %32 : vector<16x256xf32>
    %cst_7 = arith.constant 1.000000e+00 : f32
    %cst_8 = arith.constant 0.000000e+00 : f32
    %34 = vector.broadcast %cst_7 : f32 to vector<16x256xf32>
    %35 = vector.broadcast %cst_8 : f32 to vector<16x256xf32>
    %36 = arith.select %33, %34, %35 : vector<16x256xi1>, vector<16x256xf32>
    %c0 = arith.constant 0 : index
    %c0_9 = arith.constant 0 : index
    %37 = vector.load %arg1[%c0, %c0_9] : memref<4x16xf32, #tpu.memory_space<vmem>>, vector<4x16xf32>
    %cst_10 = arith.constant dense<0.000000e+00> : vector<4x256xf32>
    %38 = tpu.matmul %37, %14, %cst_10 {dimension_numbers = #tpu.dot_dimension_numbers<[1], [0], [0], [1], [0, 0, 1, 1], [], []>} : vector<4x16xf32>, vector<16x256xf32>, vector<4x256xf32> -> vector<4x256xf32>
    %c0_11 = arith.constant 0 : index
    %c0_12 = arith.constant 0 : index
    %39 = vector.load %arg2[%c0_11, %c0_12] : memref<4x16xf32, #tpu.memory_space<vmem>>, vector<4x16xf32>
    %cst_13 = arith.constant dense<0.000000e+00> : vector<4x256xf32>
    %40 = tpu.matmul %39, %36, %cst_13 {dimension_numbers = #tpu.dot_dimension_numbers<[1], [0], [0], [1], [0, 0, 1, 1], [], []>} : vector<4x16xf32>, vector<16x256xf32>, vector<4x256xf32> -> vector<4x256xf32>
    %41 = arith.mulf %38, %40 : vector<4x256xf32>
    %c0_14 = arith.constant 0 : index
    %c0_15 = arith.constant 0 : index
    %42 = vector.load %arg3[%c0_14, %c0_15] : memref<4x256xf32, #tpu.memory_space<vmem>>, vector<4x256xf32>
    tpu.vector_store %arg3[%c0_14, %c0_15], %41 {strides = array<i32>} : memref<4x256xf32, #tpu.memory_space<vmem>>, vector<4x256xf32>,
    return
  }
  func.func @transform_0(%arg0: i32) -> (i32, i32) {
    %c0_i32 = arith.constant 0 : i32
    %c0_i32_0 = arith.constant 0 : i32
    %c0_i32_1 = arith.constant 0 : i32
    return %c0_i32, %c0_i32_0 : i32, i32
  }
  func.func @transform_1(%arg0: i32) -> (i32, i32) {
    %c0_i32 = arith.constant 0 : i32
    %c0_i32_0 = arith.constant 0 : i32
    %c0_i32_1 = arith.constant 0 : i32
    return %c0_i32, %c0_i32_0 : i32, i32
  }
  func.func @transform_2(%arg0: i32) -> (i32, i32) {
    %c0_i32 = arith.constant 0 : i32
    %c0_i32_0 = arith.constant 0 : i32
    return %c0_i32, %arg0 : i32, i32
  }
}

</mosaic_0001>

<bundles_post_ra>
// kernel: tpu_custom_call.1
= control target key start
LH: loop header
LB: loop body
LE: loop exit
PB: predicated region body
PF: predicated region fallthrough
CT: control target
= control target key end

     0   :  { %7 = vsyncpa [#allocation3], 0  ;;  %s403_s0 = inlined_call_operand.hbm [shape: f32[4,16], index: 0, kind: input, shape index: {}]   ;;  %s404_s1 = inlined_call_operand.hbm [shape: f32[4,16], index: 1, kind: input, shape index: {}]   ;;  %s405_s2 = inlined_call_operand.hbm [shape: f32[4,256], index: 2, kind: output, shape index: {}]  }
   0x1   :  { %8 = vsyncpa [#allocation6], 0 }
   0x2   :  { %9 = vsyncpa [#allocation4], 0  ;;  %s359_s9 = smov [#allocation2]   ;;  %s360_s11 = smov [#allocation5]  }
   0x3   :  { %s16_s10 = sshll.u32 %s359_s9, 4  ;;  %s26_s12 = sshll.u32 %s360_s11, 4  ;;  %s17_s10 = int_to_ptr.vmem [resolvable:$true] %s16_s10  ;;  %s27_s12 = int_to_ptr.vmem [resolvable:$true] %s26_s12 }
   0x4   :  { %s301_s13 = scalar_lea.vmem %s17_s10, 64  ;;  %p306_p1 = scmp.lt.s32.totalorder %s17_s10, %s17_s10 }
   0x5   :  { %p302_p0 = scmp.ne.s32.totalorder %s17_s10, %s301_s13  ;;  %p307_p2 = scmp.lt.s32.totalorder %s301_s13, %s301_s13 }
   0x7   :  { %p308_p3 = por %p307_p2, %p306_p1 }
   0x9   :  { %p309_p4 = pnand %p308_p3, %p302_p0 }
   0xb   :  { %312 = shalt.err (!%p309_p4)
}
   0xc   :  { %19 = dma.hbm_to_vmem [thread:$0]  %s403_s0, 64, %s17_s10, [#allocation3]  }
   0xd   :  { %s321_s16 = scalar_lea.vmem %s27_s12, 64  ;;  %p326_p6 = scmp.lt.s32.totalorder %s27_s12, %s27_s12 }
   0xe   :  { %p322_p5 = scmp.ne.s32.totalorder %s27_s12, %s321_s16  ;;  %p327_p7 = scmp.lt.s32.totalorder %s321_s16, %s321_s16 }
  0x10   :  { %p328_p8 = por %p327_p7, %p326_p6 }
  0x12   :  { %p329_p9 = pnand %p328_p8, %p322_p5 }
  0x14   :  { %332 = shalt.err (!%p329_p9)
}
  0x15   :  { %29 = dma.hbm_to_vmem [thread:$0]  %s404_s1, 64, %s27_s12, [#allocation6]  }
  0x16   :  { %353 = dma.done.wait [#allocation3], 64  }
  0x17   :  { %354 = vsyncadd [#allocation3], 4294967232 }
  0x18   :  { %355 = dma.done.wait [#allocation6], 64  }
  0x19   :  { %356 = vsyncadd [#allocation6], 4294967232  ;;  %v37_v0 = vlaneseq  ;;  %v361_v1 = vmov 0.0   ;;  %v362_v15 = vmov 1.0   ;;  %v104_v19 = vld [vmem:[#allocation2] sm:$0xf] }
  0x1a   :  { %173 = vmatprep.mubr.f32.mxu0 %v361_v1  ;;  %248 = vmatprep.mubr.f32.mxu1 %v361_v1  ;;  %v180_v40 = vld [vmem:[#allocation5] sm:$0xf]  ;;  %s363_s0 = smov [#allocation7]  }
  0x1b   :  { %v38_v2 = vand.u32 127, %v37_v0  ;;  %v44_v3 = vshrl.u32 %v37_v0, 7  ;;  %s268_s1 = sshll.u32 %s363_s0, 4  ;;  %s269_s1 = int_to_ptr.vmem [resolvable:$true] %s268_s1 }
  0x1c   :  { %s333_s19 = scalar_lea.vmem %s269_s1, 128  ;;  %p338_p11 = scmp.lt.s32.totalorder %s269_s1, %s269_s1 }
  0x1d   :  { %v39_v4 = vadd.s32 128, %v38_v2  ;;  %v45_v5 = vadd.s32 8, %v44_v3  ;;  %v46_v6 = vmul.u32 16, %v44_v3  ;;  %v88_v33 = vcvt.s32.f32 %v38_v2  ;;  %p334_p10 = scmp.ne.s32.totalorder %s269_s1, %s333_s19  ;;  %p339_p12 = scmp.lt.s32.totalorder %s333_s19, %s333_s19 }
  0x1e   :  { %v94_v36 = vcvt.s32.f32 %v44_v3 }
  0x1f   :  { %v47_v7 = vmul.u32 16, %v45_v5  ;;  %vm49_vm0 = vcmp.ge.s32.totalorder %v39_v4, %v46_v6  ;;  %v52_v8 = vadd.s32 16, %v46_v6  ;;  %vm48_vm1 = vcmp.ge.s32.totalorder %v38_v2, %v46_v6  ;;  %p340_p13 = por %p339_p12, %p338_p11 }
  0x20   :  { %v89_v31 = vcvt.s32.f32 %v39_v4  ;;  %v95_v35 = vcvt.s32.f32 %v45_v5 }
  0x21   :  { %vm51_vm2 = vcmp.ge.s32.totalorder %v39_v4, %v47_v7  ;;  %v53_v9 = vadd.s32 16, %v47_v7  ;;  %vm55_vm3 = vcmp.lt.s32.totalorder %v39_v4, %v52_v8  ;;  %vm50_vm4 = vcmp.ge.s32.totalorder %v38_v2, %v47_v7  ;;  %p341_p0 = pnand %p340_p13, %p334_p10 }
  0x22   :  { %vm385_vm5 = vmand %vm49_vm0, %vm55_vm3  ;;  %vm67_vm6 = vcmp.ge.s32.totalorder %v39_v4, %v52_v8  ;;  %vm54_vm7 = vcmp.lt.s32.totalorder %v38_v2, %v52_v8  ;;  %vm66_vm8 = vcmp.ge.s32.totalorder %v38_v2, %v52_v8  ;;  %vm105_vm0 = vcmask 130048  }
  0x23   :  { %vm57_vm9 = vcmp.lt.s32.totalorder %v39_v4, %v53_v9  ;;  %vm56_vm10 = vcmp.lt.s32.totalorder %v38_v2, %v53_v9  ;;  %vm69_vm11 = vcmp.ge.s32.totalorder %v39_v4, %v53_v9  ;;  %v71_v11 = vsel %vm67_vm6, 1.0, %v361_v1  ;;  %vm389_vm12 = vmand %vm48_vm1, %vm54_vm7 }
  0x24   :  { %vm61_vm13 = vmand %vm51_vm2, %vm57_vm9  ;;  %v73_v13 = vsel %vm69_vm11, 1.0, %v361_v1  ;;  %vm68_vm14 = vcmp.ge.s32.totalorder %v38_v2, %v53_v9  ;;  %v70_v14 = vsel %vm66_vm8, 1.0, %v361_v1 }
  0x25   :  { %278 = vmatprep.subr.msk.mxu0 %vm61_vm13, %v362_v15  ;;  %vm60_vm15 = vmand %vm50_vm4, %vm56_vm10  ;;  %v81_v16 = vadd.f32 %v73_v13, %v71_v11  ;;  %v72_v17 = vsel %vm68_vm14, 1.0, %v361_v1 }
  0x26   :  { %279 = vmatpush1.msk.msra.mxu0 %vm60_vm15, %v362_v15  ;;  %v74_v18 = vadd.f32 %v72_v17, %v70_v14 }
  0x27   :  { %280 = vmatprep.subr.msk.mxu0 %vm385_vm5, %v362_v15  ;;  %v82_v20 = vrot.slane %v81_v16, 4 }
  0x28   :  { %281 = vmatpush1.msk.msra.mxu0 %vm389_vm12, %v362_v15  ;;  %v75_v21 = vrot.slane %v74_v18, 4 }
  0x29   :  { %v83_v22 = vadd.f32 %v82_v20, %v81_v16  ;;  %282 = vmatmul.mubr.msk.f32.vlgmr.msra.gmra.mxu0 %vm105_vm0, %v104_v19 }
  0x2a   :  { %v76_v23 = vadd.f32 %v75_v21, %v74_v18 }
  0x2b   :  { %v84_v24 = vrot.slane %v83_v22, 2 }
  0x2c   :  { %v77_v25 = vrot.slane %v76_v23, 2 }
  0x2d   :  { %v85_v26 = vadd.f32 %v84_v24, %v83_v22 }
  0x2e   :  { %v78_v27 = vadd.f32 %v77_v25, %v76_v23 }
  0x2f   :  { %v86_v28 = vrot.slane %v85_v26, 1 }
  0x30   :  { %v79_v29 = vrot.slane %v78_v27, 1 }
  0x31   :  { %v87_v30 = vadd.f32 %v86_v28, %v85_v26 }
  0x32   :  { %v80_v32 = vadd.f32 %v79_v29, %v78_v27 }
  0x33   :  { %v91_v34 = vmul.f32 16.0, %v87_v30 }
  0x34   :  { %v90_v37 = vmul.f32 16.0, %v80_v32 }
  0x35   :  { %v93_v38 = vsub.f32 %v89_v31, %v91_v34 }
  0x36   :  { %v92_v39 = vsub.f32 %v88_v33, %v90_v37 }
  0x37   :  { %vm99_vm1 = vcmp.eq.f32.partialorder %v95_v35, %v93_v38  ;;  %vm97_vm2 = vcmp.eq.f32.partialorder %v94_v36, %v93_v38 }
  0x38   :  { %283 = vmatprep.subr.msk.mxu1 %vm99_vm1, %v362_v15  ;;  %vm98_vm3 = vcmp.eq.f32.partialorder %v95_v35, %v92_v39  ;;  %vm96_vm4 = vcmp.eq.f32.partialorder %v94_v36, %v92_v39 }
  0x39   :  { %284 = vmatpush1.msk.msra.mxu1 %vm98_vm3, %v362_v15 }
  0x3a   :  { %285 = vmatprep.subr.msk.mxu1 %vm97_vm2, %v362_v15 }
  0x3b   :  { %286 = vmatpush1.msk.msra.mxu1 %vm96_vm4, %v362_v15 }
  0x3c   :  { %287 = vmatmul.mubr.msk.f32.vlgmr.msra.gmra.mxu1 %vm105_vm0, %v180_v40 }
  0xe9   :  { %v175_v41 = vpop.f32.mrf.mxu0 }
  0xeb   :  { %v177_v43 = vpop.f32.mrf.mxu0 }
  0xfc   :  { %v250_v42 = vpop.f32.mrf.mxu1 }
  0xfd   :  { %v255_v45 = vmul.f32 %v250_v42, %v175_v41 }
  0xfe   :  { %v252_v44 = vpop.f32.mrf.mxu1 }
  0xff   :  { %v256_v46 = vmul.f32 %v252_v44, %v177_v43 }
 0x101   :  { %v259_v47 = vcombine.low %v255_v45, %v256_v46 }
 0x103   :  { %261 = vst [vmem:[#allocation7] sm:$0xff] %v259_v47 }
 0x104   :  { %344 = shalt.err (!%p341_p0)
}
 0x105   :  { %271 = dma.vmem_to_hbm [thread:$0]  %s269_s1, 128, %s405_s2, [#allocation4]  }
 0x106   :  { %357 = dma.done.wait [#allocation4], 128  }
 0x107   :  { %358 = vsyncadd [#allocation4], 4294967168 }
 0x108   :  { %275 = vsyncpa [#allocation3], 1 }
 0x109   :  { %276 = vsyncpa [#allocation6], 1 }
 0x10a   :  { %277 = vsyncpa [#allocation4], 1 }

</bundles_post_ra>
